<compile_context>
chip_gen: v5e
topology: v5e:2x2
jax: 0.10.0
libtpu: 0.0.40
codegen_flags: <defaults>
</compile_context>

<pallas_src>
import math
from functools import partial

import jax
import jax.numpy as jnp
from jax.experimental import pallas as pl
from jax.experimental.pallas import tpu as pltpu


def _round_up(x, m):
    return (x + m - 1) // m * m


# ---------------------------------------------------------------------------
# Kernel 1: Encoder MLP  h = F.normalize(relu(x @ W^T + b), p=2, dim=1)
# ---------------------------------------------------------------------------
def encoder_kernel(x_ref, wt_ref, b_ref, h_ref):
    x = x_ref[...]                                              # (TM, Din_p) bf16
    h = jnp.dot(x, wt_ref[...], preferred_element_type=jnp.float32)
    h = h + b_ref[...]                                          # (TM, Dout_p) f32
    h = jnp.maximum(h, 0.0)                                     # ReLU
    ss = jnp.sum(h * h, axis=1, keepdims=True)                  # (TM, 1)
    h = h * jax.lax.rsqrt(ss + 1e-24)                           # L2 normalize (EUP)
    h_ref[...] = h.astype(h_ref.dtype)                          # bf16 out


# ---------------------------------------------------------------------------
# Kernel 2: mean aggregation + attention blend + scores + BCE terms
#   scalar-prefetch args: occ (tile occupancy), fetch_i/fetch_k (DMA aliasing)
# ---------------------------------------------------------------------------
def aggregate_kernel(occ_ref, fi_ref, fk_ref,
                     adj_ref, hsrc_ref, hdst_ref, center_ref, *rest,
                     beta, neigh_weight, n_src_tiles, tile_k, hsrc_resident):
    del fi_ref, fk_ref                      # only used by the adj index_map
    if beta != 0.0:                         # static (compile-time) branch
        pre_ref = rest[0]
        rest = rest[1:]
    posm_ref, negm_ref, invdeg_ref, scores_ref, pos_ref, neg_ref, acc_ref = rest

    i = pl.program_id(0)
    k = pl.program_id(1)

    @pl.when(k == 0)
    def _():
        acc_ref[...] = jnp.zeros_like(acc_ref)

    # Skip the matmul entirely for all-zero adjacency tiles (the adj index_map
    # also aliases the block index so no DMA was issued for them).
    @pl.when(occ_ref[i * n_src_tiles + k] != 0)
    def _():
        if hsrc_resident:
            start = pl.multiple_of(k * tile_k, tile_k)
            hsrc = hsrc_ref[pl.ds(start, tile_k), :]
        else:
            hsrc = hsrc_ref[...]
        acc_ref[...] += jnp.dot(adj_ref[...], hsrc,
                                preferred_element_type=jnp.float32)

    @pl.when(k == pl.num_programs(1) - 1)
    def _():
        acc = acc_ref[...]                                      # sum over neighbors, f32
        h_dst = hdst_ref[...].astype(jnp.float32)               # (TM, D_p) f32
        center = center_ref[...]                                # (1,  D_p) f32
        inv_deg = invdeg_ref[...]                               # (1,  TM)  f32

        # Row-wise dot products produced directly as (1, TM) rows so that all
        # per-node math and stores are lane-dense (no masked vst, no relayout).
        # mean_h = acc * inv_deg is never materialized: the 1/deg scale is
        # folded (in f32) into the row-reduction results instead.
        contract = (((1,), (1,)), ((), ()))
        ones_row = jnp.ones((1, acc.shape[1]), jnp.float32)
        post_attn = jax.lax.dot_general(
            ones_row, h_dst * acc, contract,
            preferred_element_type=jnp.float32) * inv_deg        # <h_dst, mean_h>
        s_dst = jax.lax.dot_general(center, h_dst, contract,
                                    preferred_element_type=jnp.float32)
        s_mean = jax.lax.dot_general(
            center, acc, contract,
            preferred_element_type=jnp.float32) * inv_deg        # <mean_h, center>

        if beta != 0.0:
            attn = beta * pre_ref[...] + (1.0 - beta) * post_attn
        else:
            attn = post_attn

        nei = attn * neigh_weight
        # <nei*mean_h + (1-nei)*h_dst, center> == nei*s_mean + (1-nei)*s_dst
        scores = nei * s_mean + (1.0 - nei) * s_dst             # (1, TM)
        scores_ref[...] = scores

        # BCEWithLogitsLoss elementwise terms (numerically stable softplus),
        # masked per label group; the final mean/add happens in the wrapper.
        log1pexp = jnp.log1p(jnp.exp(-jnp.abs(scores)))
        pos_ref[...] = (log1pexp + jnp.maximum(-scores, 0.0)) * posm_ref[...]
        neg_ref[...] = (log1pexp + jnp.maximum(scores, 0.0)) * negm_ref[...]


# ---------------------------------------------------------------------------
# Plain-JAX glue mirroring GlobalModel.pre_attention (torch.var is unbiased).
# ---------------------------------------------------------------------------
def pre_attention(pos_diff, nor_idx):
    nd = pos_diff[nor_idx]
    mean = nd.mean()
    std = jnp.sqrt(nd.var(ddof=1))
    normalized = (pos_diff - mean) / std
    return (1.0 - jax.nn.sigmoid(normalized))[:, None]          # [N_total, 1]


# ---------------------------------------------------------------------------
# One-time graph preparation: pad/cast static operands, build sparsity tables.
# (Hoisted out of the per-call hot path so the big adj pad+cast is not paid
#  on every forward.)
# ---------------------------------------------------------------------------
def prepare_graph(feats, w, b, adj, center, *, tile_m=512, tile_k=512):
    n_src, in_dim = feats.shape
    out_dim = w.shape[0]
    n_dst = adj.shape[0]

    f32, bf16 = jnp.float32, jnp.bfloat16

    # Clamp tiles for tiny graphs (avoid over-padding).  For mid-size graphs
    # keep >= 2 dst tiles so the "parallel" dst axis shards across both v7x
    # TensorCores.
    tile_m = min(tile_m, _round_up(n_dst, 256))
    tile_k = min(tile_k, _round_up(max(n_src, n_dst), 256))
    if n_dst > 256 and _round_up(n_dst, tile_m) // tile_m < 2:
        tile_m = max(256, tile_m // 2)

    din_p = _round_up(in_dim, 128)
    dout_p = _round_up(out_dim, 128)
    ndst_p = _round_up(n_dst, tile_m)
    unit = math.lcm(tile_m, tile_k)
    nsrc_p = _round_up(max(n_src, ndst_p), unit)
    n_dst_tiles = ndst_p // tile_m
    n_src_tiles = nsrc_p // tile_k

    # Zero padding is exact for all downstream math.
    feats_p = jnp.zeros((nsrc_p, din_p), bf16).at[:n_src, :in_dim].set(
        feats.astype(bf16))
    wt_p = jnp.zeros((din_p, dout_p), bf16).at[:in_dim, :out_dim].set(
        w.T.astype(bf16))
    b_p = jnp.zeros((1, dout_p), f32).at[0, :out_dim].set(b.astype(f32))
    center_p = jnp.zeros((1, dout_p), f32).at[0, :out_dim].set(center.astype(f32))

    # UN-normalized adjacency in bf16 (0/1 edge weights stay exact); the
    # per-row 1/degree is applied in f32 inside the kernel epilogue.
    adj_f32 = adj.astype(f32)
    deg = jnp.sum(adj_f32, axis=1)
    inv_deg = jnp.where(deg > 0, 1.0 / jnp.where(deg > 0, deg, 1.0), 0.0)
    adj_p = jnp.zeros((ndst_p, nsrc_p), bf16).at[:n_dst, :n_src].set(
        adj_f32.astype(bf16))
    invdeg_row = jnp.zeros((1, ndst_p), f32).at[0, :n_dst].set(inv_deg)

    # Tile-occupancy table + "last fetched block" tables for DMA skipping of
    # all-zero adj tiles (scalar-prefetched; grid order is i outer, k inner).
    occ = (jnp.abs(adj_p.astype(f32))
           .reshape(n_dst_tiles, tile_m, n_src_tiles, tile_k)
           .sum(axis=(1, 3)) > 0)
    occ_flat = occ.reshape(-1).astype(jnp.int32)
    idx = jnp.arange(n_dst_tiles * n_src_tiles, dtype=jnp.int32)
    marked = jnp.where(occ_flat > 0, idx, -1)
    last = jax.lax.cummax(marked, axis=0)
    last = jnp.where(last < 0, idx, last)
    fetch_i = (last // n_src_tiles).astype(jnp.int32)
    fetch_k = (last % n_src_tiles).astype(jnp.int32)

    return dict(
        n_src=n_src, n_dst=n_dst, in_dim=in_dim, out_dim=out_dim,
        din_p=din_p, dout_p=dout_p, ndst_p=ndst_p, nsrc_p=nsrc_p,
        tile_m=tile_m, tile_k=tile_k,
        n_dst_tiles=n_dst_tiles, n_src_tiles=n_src_tiles,
        feats_p=feats_p, wt_p=wt_p, b_p=b_p, adj_p=adj_p, center_p=center_p,
        invdeg_row=invdeg_row, occ_flat=occ_flat,
        fetch_i=fetch_i, fetch_k=fetch_k,
    )


# ---------------------------------------------------------------------------
# Forward pass
# ---------------------------------------------------------------------------
def global_model_forward(g, pre_attn_full, labels_full, out_nodes, epoch,
                         *, neigh_weight=0.2, beta0=0.9):
    f32, bf16 = jnp.float32, jnp.bfloat16

    (n_dst, din_p, dout_p, ndst_p, nsrc_p, tile_m, tile_k,
     n_dst_tiles, n_src_tiles) = (
        g["n_dst"], g["din_p"], g["dout_p"], g["ndst_p"], g["nsrc_p"],
        g["tile_m"], g["tile_k"], g["n_dst_tiles"], g["n_src_tiles"])

    beta = math.pow(beta0, epoch)
    if beta < 0.1:
        beta = 0.0
    use_pre = beta != 0.0

    # 48 MiB scoped VMEM: well under v7x's 64 MiB/TC, comfortably enables the
    # 512-class tiles and a resident h_all on v5e/v6e (128 MiB physical).
    cparams = dict(vmem_limit_bytes=48 * 1024 * 1024)

    # --- kernel 1: encoder over src-row tiles (tile_k rows per step) ---------
    h_all = pl.pallas_call(
        encoder_kernel,
        out_shape=jax.ShapeDtypeStruct((nsrc_p, dout_p), bf16),
        grid_spec=pltpu.PrefetchScalarGridSpec(
            num_scalar_prefetch=0,
            grid=(nsrc_p // tile_k,),
            in_specs=[
                pl.BlockSpec((tile_k, din_p), lambda i: (i, 0)),
                pl.BlockSpec((din_p, dout_p), lambda i: (0, 0)),
                pl.BlockSpec((1, dout_p), lambda i: (0, 0)),
            ],
            out_specs=pl.BlockSpec((tile_k, dout_p), lambda i: (i, 0)),
        ),
        compiler_params=pltpu.CompilerParams(
            dimension_semantics=("parallel",), **cparams),
        cost_estimate=pl.CostEstimate(
            flops=2 * nsrc_p * din_p * dout_p,
            transcendentals=nsrc_p,
            bytes_accessed=(nsrc_p * din_p * 2 + din_p * dout_p * 2
                            + nsrc_p * dout_p * 2)),
    )(g["feats_p"], g["wt_p"], g["b_p"])

    # --- per-call dst-node scalars in lane-dense (1, ndst_p) row layout ------
    labels_sel = labels_full[out_nodes].astype(f32)              # [n_dst]
    pos_mask = jnp.zeros((1, ndst_p), f32).at[0, :n_dst].set(1.0 - labels_sel)
    neg_mask = jnp.zeros((1, ndst_p), f32).at[0, :n_dst].set(labels_sel)
    if use_pre:
        pre_sel = pre_attn_full[out_nodes].reshape(-1).astype(f32)
        pre_row = jnp.zeros((1, ndst_p), f32).at[0, :n_dst].set(pre_sel)

    # --- kernel 2: aggregation + attention + scores + BCE terms --------------
    # Keep the encoded h resident in VMEM (fetched once, sliced per k) when it
    # fits the budget; otherwise fall back to streaming it per src tile.
    hsrc_resident = (2 * nsrc_p * dout_p * 2) <= 24 * 1024 * 1024

    kernel = partial(aggregate_kernel, beta=beta, neigh_weight=neigh_weight,
                     n_src_tiles=n_src_tiles, tile_k=tile_k,
                     hsrc_resident=hsrc_resident)

    row_spec = pl.BlockSpec((1, tile_m), lambda i, k, *_: (0, i))

    nst = n_src_tiles
    adj_spec = pl.BlockSpec(
        (tile_m, tile_k),
        lambda i, k, occ, fi, fk: (fi[i * nst + k], fk[i * nst + k]))
    if hsrc_resident:
        hsrc_spec = pl.BlockSpec((nsrc_p, dout_p), lambda i, k, *_: (0, 0))
    else:
        hsrc_spec = pl.BlockSpec((tile_k, dout_p), lambda i, k, *_: (k, 0))

    in_specs = [
        adj_spec,                                                # adj tile (DMA-skipped if empty)
        hsrc_spec,                                               # h (src rows)
        pl.BlockSpec((tile_m, dout_p), lambda i, k, *_: (i, 0)), # h (dst rows)
        pl.BlockSpec((1, dout_p), lambda i, k, *_: (0, 0)),      # center
    ]
    inputs = [g["adj_p"], h_all, h_all, g["center_p"]]
    if use_pre:
        in_specs.append(row_spec)                                # pre-attention
        inputs.append(pre_row)
    in_specs += [row_spec, row_spec, row_spec]                   # pos/neg masks, 1/deg
    inputs += [pos_mask, neg_mask, g["invdeg_row"]]

    out_shape = tuple(jax.ShapeDtypeStruct((1, ndst_p), f32) for _ in range(3))

    # TODO(synk): on v7x, an fp8 (e4m3) adjacency stream would halve the
    # dominant HBM traffic; needs generation detection + tolerance validation.
    scores_row, pos_terms, neg_terms = pl.pallas_call(
        kernel,
        out_shape=out_shape,
        grid_spec=pltpu.PrefetchScalarGridSpec(
            num_scalar_prefetch=3,
            grid=(n_dst_tiles, n_src_tiles),
            in_specs=in_specs,
            out_specs=(row_spec, row_spec, row_spec),
            scratch_shapes=[pltpu.VMEM((tile_m, dout_p), jnp.float32)],
        ),
        compiler_params=pltpu.CompilerParams(
            dimension_semantics=("parallel", "arbitrary"), **cparams),
        cost_estimate=pl.CostEstimate(
            flops=2 * ndst_p * nsrc_p * dout_p + 6 * ndst_p * dout_p,
            transcendentals=3 * ndst_p,
            bytes_accessed=(ndst_p * nsrc_p * 2 + nsrc_p * dout_p * 2
                            + ndst_p * dout_p * 2 + 6 * ndst_p * 4)),
    )(g["occ_flat"], g["fetch_i"], g["fetch_k"], *inputs)

    # Tiny epilogue: group means of the in-kernel BCE terms + pad slicing.
    # Note: max(count, 1) guard -> empty label group yields 0 instead of NaN.
    pos_loss = jnp.sum(pos_terms) / jnp.maximum(jnp.sum(pos_mask), 1.0)
    neg_loss = jnp.sum(neg_terms) / jnp.maximum(jnp.sum(neg_mask), 1.0)
    center_loss = pos_loss + neg_loss

    scores = scores_row[0, :n_dst]
    return center_loss, scores


# ---------------------------------------------------------------------------
# Plain-JAX (f32) reference for a sanity check.
# ---------------------------------------------------------------------------
def _reference(feats, w, b, adj, center, pre_attn_full, labels_full, out_nodes,
               epoch, *, neigh_weight=0.2, beta0=0.9):
    h = jnp.maximum(feats @ w.T + b, 0.0)
    h = h / jnp.maximum(jnp.linalg.norm(h, axis=1, keepdims=True), 1e-12)
    n_dst = adj.shape[0]
    h_dst = h[:n_dst]
    deg = jnp.sum(adj, axis=1, keepdims=True)
    mean_h = (adj @ h) / jnp.maximum(deg, 1.0)
    post = jnp.sum(h_dst * mean_h, axis=1, keepdims=True)
    beta = math.pow(beta0, epoch)
    if beta < 0.1:
        beta = 0.0
    attn = beta * pre_attn_full[out_nodes] + (1.0 - beta) * post
    nei = attn * neigh_weight
    hh = nei * mean_h + (1.0 - nei) * h_dst
    scores = hh @ center
    mask = labels_full[out_nodes].astype(bool)
    pos = scores[~mask]
    neg = scores[mask]
    pos_loss = jnp.mean(jnp.log1p(jnp.exp(-jnp.abs(pos))) + jnp.maximum(-pos, 0.0))
    neg_loss = jnp.mean(jnp.log1p(jnp.exp(-jnp.abs(neg))) + jnp.maximum(neg, 0.0))
    return pos_loss + neg_loss, scores


if __name__ == "__main__":
    # Small deterministic problem.
    N_TOTAL, N_SRC, N_DST = 64, 48, 24
    IN_DIM, OUT_DIM = 40, 24
    EPOCH = 3                              # beta = 0.9**3 = 0.729 (pre_attn path used)

    key = jax.random.PRNGKey(0)
    k_feat, k_w, k_b, k_adj, k_center, k_pos, k_lab = jax.random.split(key, 7)

    feats = jax.random.normal(k_feat, (N_SRC, IN_DIM), jnp.float32)
    # nn.Linear(in_dim, out_dim): weight [out_dim, in_dim], bias [out_dim]
    w = jax.random.normal(k_w, (OUT_DIM, IN_DIM), jnp.float32) / math.sqrt(IN_DIM)
    b = jax.random.normal(k_b, (OUT_DIM,), jnp.float32) * 0.01

    # TODO(synk): DGL block graph replaced by a dense 0/1 adjacency (mean over
    # in-neighbors); dst nodes are the first N_DST src nodes.
    adj = (jax.random.uniform(k_adj, (N_DST, N_SRC)) < 0.4).astype(jnp.float32)
    adj = jnp.minimum(adj + jnp.eye(N_DST, N_SRC, dtype=jnp.float32), 1.0)

    center = jax.random.normal(k_center, (OUT_DIM,), jnp.float32)
    pos_diff = jax.random.uniform(k_pos, (N_TOTAL,), jnp.float32) * 2.0
    labels_full = (jax.random.uniform(k_lab, (N_TOTAL,)) < 0.5).astype(jnp.int32)
    nor_idx = jnp.arange(0, 32)            # "normal" node indices
    out_nodes = jnp.arange(N_DST)          # dst nodes' global ids

    pre_attn_full = pre_attention(pos_diff, nor_idx)

    graph = prepare_graph(feats, w, b, adj, center)
    center_loss, scores = global_model_forward(
        graph, pre_attn_full, labels_full, out_nodes, EPOCH)
    jax.block_until_ready((center_loss, scores))

    ref_loss, ref_scores = _reference(
        feats, w, b, adj, center, pre_attn_full, labels_full, out_nodes, EPOCH)

    assert scores.shape == (N_DST,)
    assert bool(jnp.isfinite(center_loss))
    assert bool(jnp.all(jnp.isfinite(scores)))
    assert bool(jnp.allclose(scores, ref_scores, atol=0.1, rtol=0.1)), (
        "scores mismatch vs f32 reference")
    assert bool(jnp.abs(center_loss - ref_loss) < 0.1), (
        "loss mismatch vs f32 reference")
    print("KERNEL_OK")
</pallas_src>

<mosaic_0001>
module attributes {stable_mosaic.version = 11 : i64} {
  func.func @encoder_kernel(%arg0: i32, %arg1: memref<256x128xbf16, #tpu.memory_space<vmem>>, %arg2: memref<128x128xbf16, #tpu.memory_space<vmem>>, %arg3: memref<1x128xf32, #tpu.memory_space<vmem>>, %arg4: memref<256x128xbf16, #tpu.memory_space<vmem>>) attributes {dimension_semantics = [#tpu.dimension_semantics<parallel>], iteration_bounds = array<i64: 1>, scalar_prefetch = 0 : i64, scratch_operands = 0 : i64, tpu.core_type = #tpu.core_type<tc>, window_params = [{transform_indices = @transform_0, window_bounds = array<i64: 256, 128>}, {pipeline_mode = #tpu.pipeline_mode<synchronous>, transform_indices = @transform_1, window_bounds = array<i64: 128, 128>}, {pipeline_mode = #tpu.pipeline_mode<synchronous>, transform_indices = @transform_2, window_bounds = array<i64: 1, 128>}, {transform_indices = @transform_3, window_bounds = array<i64: 256, 128>}]} {
    %c0 = arith.constant 0 : index
    %c0_0 = arith.constant 0 : index
    %0 = vector.load %arg1[%c0, %c0_0] : memref<256x128xbf16, #tpu.memory_space<vmem>>, vector<256x128xbf16>
    %c0_1 = arith.constant 0 : index
    %c0_2 = arith.constant 0 : index
    %1 = vector.load %arg2[%c0_1, %c0_2] : memref<128x128xbf16, #tpu.memory_space<vmem>>, vector<128x128xbf16>
    %cst = arith.constant dense<0.000000e+00> : vector<256x128xf32>
    %2 = tpu.matmul %0, %1, %cst {dimension_numbers = #tpu.dot_dimension_numbers<[1], [0], [0], [1], [0, 0, 1, 1], [], []>} : vector<256x128xbf16>, vector<128x128xbf16>, vector<256x128xf32> -> vector<256x128xf32>
    %c0_3 = arith.constant 0 : index
    %c0_4 = arith.constant 0 : index
    %3 = vector.load %arg3[%c0_3, %c0_4] : memref<1x128xf32, #tpu.memory_space<vmem>>, vector<1x128xf32>
    %4 = vector.broadcast %3 : vector<1x128xf32> to vector<256x128xf32>
    %5 = arith.addf %2, %4 : vector<256x128xf32>
    %cst_5 = arith.constant 0.000000e+00 : f32
    %6 = vector.broadcast %cst_5 : f32 to vector<256x128xf32>
    %7 = arith.maximumf %5, %6 : vector<256x128xf32>
    %8 = arith.mulf %7, %7 : vector<256x128xf32>
    %cst_6 = arith.constant dense<0.000000e+00> : vector<256xf32>
    %9 = vector.multi_reduction <add>, %8, %cst_6 [1] : vector<256x128xf32> to vector<256xf32>
    %10 = vector.shape_cast %9 : vector<256xf32> to vector<256x1xf32>
    %cst_7 = arith.constant 1.000000e-24 : f32
    %11 = vector.broadcast %cst_7 : f32 to vector<256x1xf32>
    %12 = arith.addf %10, %11 : vector<256x1xf32>
    %13 = math.rsqrt %12 : vector<256x1xf32>
    %14 = vector.broadcast %13 : vector<256x1xf32> to vector<256x128xf32>
    %15 = arith.mulf %7, %14 : vector<256x128xf32>
    %16 = arith.truncf %15 : vector<256x128xf32> to vector<256x128xbf16>
    %c0_8 = arith.constant 0 : index
    %c0_9 = arith.constant 0 : index
    %17 = vector.load %arg4[%c0_8, %c0_9] : memref<256x128xbf16, #tpu.memory_space<vmem>>, vector<256x128xbf16>
    tpu.vector_store %arg4[%c0_8, %c0_9], %16 {strides = array<i32>} : memref<256x128xbf16, #tpu.memory_space<vmem>>, vector<256x128xbf16>,
    return
  }
  func.func @transform_0(%arg0: i32) -> (i32, i32) {
    %c0_i32 = arith.constant 0 : i32
    %c0_i32_0 = arith.constant 0 : i32
    return %arg0, %c0_i32 : i32, i32
  }
  func.func @transform_1(%arg0: i32) -> (i32, i32) {
    %c0_i32 = arith.constant 0 : i32
    %c0_i32_0 = arith.constant 0 : i32
    %c0_i32_1 = arith.constant 0 : i32
    return %c0_i32, %c0_i32_0 : i32, i32
  }
  func.func @transform_2(%arg0: i32) -> (i32, i32) {
    %c0_i32 = arith.constant 0 : i32
    %c0_i32_0 = arith.constant 0 : i32
    %c0_i32_1 = arith.constant 0 : i32
    return %c0_i32, %c0_i32_0 : i32, i32
  }
  func.func @transform_3(%arg0: i32) -> (i32, i32) {
    %c0_i32 = arith.constant 0 : i32
    %c0_i32_0 = arith.constant 0 : i32
    return %arg0, %c0_i32 : i32, i32
  }
}

</mosaic_0001>

<bundles_post_ra>
// kernel: tpu_custom_call.1
= control target key start
LH: loop header
LB: loop body
LE: loop exit
PB: predicated region body
PF: predicated region fallthrough
CT: control target
= control target key end

     0   :  { %8 = vsyncpa [#allocation3], 0  ;;  %s2051_s0 = inlined_call_operand.hbm [shape: bf16[256,128], index: 0, kind: input, shape index: {}]   ;;  %s2052_s1 = inlined_call_operand.hbm [shape: bf16[128,128], index: 1, kind: input, shape index: {}]   ;;  %s2053_s2 = inlined_call_operand.vmem [shape: f32[1,128], index: 2, kind: input, shape index: {}]   ;;  %s2054_s3 = inlined_call_operand.hbm [shape: bf16[256,128], index: 3, kind: output, shape index: {}]  }
   0x1   :  { %9 = vsyncpa [#allocation6], 0 }
   0x2   :  { %10 = vsyncpa [#allocation4], 0  ;;  %s15_s14 = sshll.u32 %s2051_s0, 4  ;;  %s1315_s15 = smov [#allocation2]   ;;  %s16_s14 = int_to_ptr.hbm [resolvable:$true] %s15_s14 }
   0x3   :  { %s17_s16 = sshll.u32 %s1315_s15, 4  ;;  %s28_s19 = sshll.u32 %s2052_s1, 4  ;;  %s18_s16 = int_to_ptr.vmem [resolvable:$true] %s17_s16  ;;  %s29_s19 = int_to_ptr.hbm [resolvable:$true] %s28_s19 }
   0x4   :  { %s1316_s20 = smov 64   ;;  %s1317_s21 = smov 4  }
   0x5   :  { %23 = dma.hbm_to_vmem [thread:$0]  %s16_s14, 2048, %s18_s16, [#allocation3], %s1316_s20, %s1316_s20, %s1317_s21  }
   0x6   :  { %s1318_s22 = smov [#allocation5]  }
   0x7   :  { %s30_s23 = sshll.u32 %s1318_s22, 4  ;;  %s31_s23 = int_to_ptr.vmem [resolvable:$true] %s30_s23 }
   0x8   :  { %36 = dma.hbm_to_vmem [thread:$0]  %s29_s19, 1024, %s31_s23, [#allocation6], %s1316_s20, %s1316_s20, %s1317_s21  }
   0x9   :  { %1309 = dma.done.wait [#allocation3], 2048  }
   0xa   :  { %1310 = vsyncadd [#allocation3], 4294965248 }
   0xb   :  { %1311 = dma.done.wait [#allocation6], 1024  }
   0xc   :  { %1312 = vsyncadd [#allocation6], 4294966272  ;;  %v1047_v0 = vld [vmem:[#allocation5 + $0x38] sm:$0xff]  ;;  %v1046_v1 = vld [vmem:[#allocation5 + $0x30] sm:$0xff]  ;;  %s914_s27 = sshll.u32 %s2054_s3, 4  ;;  %s915_s27 = int_to_ptr.hbm [resolvable:$true] %s914_s27 }
   0xd   :  { %243 = vmatpush.bf16.msra.mxu0 %v1047_v0  ;;  %1143 = vmatpush.bf16.msra.mxu1 %v1047_v0  ;;  %v1045_v2 = vld [vmem:[#allocation5 + $0x28] sm:$0xff]  ;;  %v1044_v3 = vld [vmem:[#allocation5 + $0x20] sm:$0xff]  ;;  %v1043_v4 = vld [vmem:[#allocation5 + $0x18] sm:$0xff] }
   0xe   :  { %1144 = vmatpush.bf16.msra.mxu2 %v1047_v0  ;;  %1145 = vmatpush.bf16.msra.mxu3 %v1047_v0  ;;  %v1042_v5 = vld [vmem:[#allocation5 + $0x10] sm:$0xff]  ;;  %v1041_v6 = vld [vmem:[#allocation5 + $0x8] sm:$0xff]  ;;  %v1040_v7 = vld [vmem:[#allocation5] sm:$0xff] }
   0xf   :  { %v1024_v8 = vld [vmem:[#allocation2] sm:$0xff]  ;;  %v1025_v12 = vld [vmem:[#allocation2 + $0x8] sm:$0xff]  ;;  %v1026_v16 = vld [vmem:[#allocation2 + $0x10] sm:$0xff] }
  0x10   :  { %v1028_v9 = vld [vmem:[#allocation2 + $0x20] sm:$0xff]  ;;  %v1029_v13 = vld [vmem:[#allocation2 + $0x28] sm:$0xff]  ;;  %v1030_v17 = vld [vmem:[#allocation2 + $0x30] sm:$0xff] }
  0x11   :  { %244 = vmatpush.bf16.msra.mxu0 %v1046_v1  ;;  %1146 = vmatpush.bf16.msra.mxu1 %v1046_v1  ;;  %v1032_v10 = vld [vmem:[#allocation2 + $0x40] sm:$0xff]  ;;  %v1037_v14 = vld [vmem:[#allocation2 + $0x68] sm:$0xff]  ;;  %v1034_v18 = vld [vmem:[#allocation2 + $0x50] sm:$0xff] }
  0x12   :  { %1147 = vmatpush.bf16.msra.mxu2 %v1046_v1  ;;  %1148 = vmatpush.bf16.msra.mxu3 %v1046_v1  ;;  %v1036_v11 = vld [vmem:[#allocation2 + $0x60] sm:$0xff]  ;;  %v1033_v15 = vld [vmem:[#allocation2 + $0x48] sm:$0xff]  ;;  %v1038_v19 = vld [vmem:[#allocation2 + $0x70] sm:$0xff] }
  0x13   :  { %v1027_v20 = vld [vmem:[#allocation2 + $0x18] sm:$0xff]  ;;  %v1355_v24 = vld [vmem:[%s2053_s2] ss:$0 sm:$0xff]  ;;  %s1319_s2 = smov [#allocation7]  }
  0x14   :  { %v1031_v21 = vld [vmem:[#allocation2 + $0x38] sm:$0xff]  ;;  %s912_s24 = sshll.u32 %s1319_s2, 4  ;;  %s913_s24 = int_to_ptr.vmem [resolvable:$true] %s912_s24 }
  0x15   :  { %245 = vmatpush.bf16.msra.mxu0 %v1045_v2  ;;  %1149 = vmatpush.bf16.msra.mxu1 %v1045_v2  ;;  %v1035_v22 = vld [vmem:[#allocation2 + $0x58] sm:$0xff] }
  0x16   :  { %1150 = vmatpush.bf16.msra.mxu2 %v1045_v2  ;;  %1151 = vmatpush.bf16.msra.mxu3 %v1045_v2  ;;  %v1039_v23 = vld [vmem:[#allocation2 + $0x78] sm:$0xff] }
  0x19   :  { %246 = vmatpush.bf16.msra.mxu0 %v1044_v3  ;;  %1152 = vmatpush.bf16.msra.mxu1 %v1044_v3 }
  0x1a   :  { %1153 = vmatpush.bf16.msra.mxu2 %v1044_v3  ;;  %1154 = vmatpush.bf16.msra.mxu3 %v1044_v3 }
  0x1d   :  { %247 = vmatpush.bf16.msra.mxu0 %v1043_v4  ;;  %1155 = vmatpush.bf16.msra.mxu1 %v1043_v4 }
  0x1e   :  { %1156 = vmatpush.bf16.msra.mxu2 %v1043_v4  ;;  %1157 = vmatpush.bf16.msra.mxu3 %v1043_v4 }
  0x21   :  { %248 = vmatpush.bf16.msra.mxu0 %v1042_v5  ;;  %1158 = vmatpush.bf16.msra.mxu1 %v1042_v5 }
  0x22   :  { %1159 = vmatpush.bf16.msra.mxu2 %v1042_v5  ;;  %1160 = vmatpush.bf16.msra.mxu3 %v1042_v5 }
  0x25   :  { %249 = vmatpush.bf16.msra.mxu0 %v1041_v6  ;;  %1161 = vmatpush.bf16.msra.mxu1 %v1041_v6 }
  0x26   :  { %1162 = vmatpush.bf16.msra.mxu2 %v1041_v6  ;;  %1163 = vmatpush.bf16.msra.mxu3 %v1041_v6 }
  0x29   :  { %250 = vmatpush.bf16.msra.mxu0 %v1040_v7  ;;  %1164 = vmatpush.bf16.msra.mxu1 %v1040_v7 }
  0x2a   :  { %1165 = vmatpush.bf16.msra.mxu2 %v1040_v7  ;;  %1166 = vmatpush.bf16.msra.mxu3 %v1040_v7 }
  0x2c   :  { %251 = vmatmul.bf16.vlgmr.msra.gmra.mxu0 %v1024_v8  ;;  %271 = vmatmul.bf16.vlgmr.msra.gmra.mxu1 %v1028_v9 }
  0x2d   :  { %291 = vmatmul.bf16.vlgmr.msra.gmra.mxu2 %v1032_v10  ;;  %311 = vmatmul.bf16.vlgmr.msra.gmra.mxu3 %v1036_v11 }
  0x3c   :  { %256 = vmatmul.bf16.gmra.mxu0 %v1025_v12  ;;  %276 = vmatmul.bf16.gmra.mxu1 %v1029_v13 }
  0x3d   :  { %316 = vmatmul.bf16.gmra.mxu3 %v1037_v14  ;;  %296 = vmatmul.bf16.gmra.mxu2 %v1033_v15 }
  0x4c   :  { %261 = vmatmul.bf16.gmra.mxu0 %v1026_v16  ;;  %281 = vmatmul.bf16.gmra.mxu1 %v1030_v17 }
  0x4d   :  { %301 = vmatmul.bf16.gmra.mxu2 %v1034_v18  ;;  %321 = vmatmul.bf16.gmra.mxu3 %v1038_v19 }
  0x5c   :  { %266 = vmatmul.bf16.gmra.mxu0 %v1027_v20  ;;  %286 = vmatmul.bf16.gmra.mxu1 %v1031_v21 }
  0x5d   :  { %306 = vmatmul.bf16.gmra.mxu2 %v1035_v22  ;;  %326 = vmatmul.bf16.gmra.mxu3 %v1039_v23 }
  0xa9   :  { %v252_v25 = vpop.f32.mrf.mxu0  ;;  %v272_v26 = vpop.f32.mrf.mxu1 }
  0xaa   :  { %v253_v27 = vadd.f32 %v1355_v24, %v252_v25  ;;  %v273_v28 = vadd.f32 %v1355_v24, %v272_v26 }
  0xac   :  { %v1359_v29 = vmax.f32 %v253_v27, 0.0  ;;  %v1361_v30 = vmax.f32 %v273_v28, 0.0 }
  0xae   :  { %v372_v31 = vmul.f32 %v1361_v30, %v1361_v30  ;;  %v364_v32 = vmul.f32 %v1359_v29, %v1359_v29 }
  0xb0   :  { %v292_v33 = vpop.f32.mrf.mxu2  ;;  %v312_v34 = vpop.f32.mrf.mxu3  ;;  %412 = vadd.xlane.f32.xlu2 %v372_v31  ;;  %396 = vadd.xlane.f32.xlu0 %v364_v32 }
  0xb1   :  { %v293_v35 = vadd.f32 %v1355_v24, %v292_v33  ;;  %v313_v36 = vadd.f32 %v1355_v24, %v312_v34  ;;  %v254_v37 = vpop.f32.mrf.mxu0  ;;  %v274_v38 = vpop.f32.mrf.mxu1 }
  0xb2   :  { %v255_v42 = vadd.f32 %v1355_v24, %v254_v37  ;;  %v275_v56 = vadd.f32 %v1355_v24, %v274_v38 }
  0xb3   :  { %v1369_v39 = vmax.f32 %v293_v35, 0.0  ;;  %v1371_v40 = vmax.f32 %v313_v36, 0.0 }
  0xb4   :  { %v1380_v50 = vmax.f32 %v255_v42, 0.0  ;;  %v1397_v0 = vmax.f32 %v275_v56, 0.0 }
  0xb5   :  { %v380_v41 = vmul.f32 %v1369_v39, %v1369_v39  ;;  %v388_v43 = vmul.f32 %v1371_v40, %v1371_v40 }
  0xb6   :  { %v365_v57 = vmul.f32 %v1380_v50, %v1380_v50  ;;  %v373_v7 = vmul.f32 %v1397_v0, %v1397_v0 }
  0xb7   :  { %428 = vadd.xlane.f32.xlu1 %v380_v41 }
  0xb8   :  { %v294_v44 = vpop.f32.mrf.mxu2  ;;  %v314_v45 = vpop.f32.mrf.mxu3  ;;  %444 = vadd.xlane.f32.xlu0 %v388_v43 }
  0xb9   :  { %v295_v46 = vadd.f32 %v1355_v24, %v294_v44  ;;  %v315_v47 = vadd.f32 %v1355_v24, %v314_v45  ;;  %v257_v48 = vpop.f32.mrf.mxu0  ;;  %v277_v49 = vpop.f32.mrf.mxu1 }
  0xba   :  { %v258_v53 = vadd.f32 %v1355_v24, %v257_v48  ;;  %v278_v1 = vadd.f32 %v1355_v24, %v277_v49 }
  0xbb   :  { %v1382_v51 = vmax.f32 %v295_v46, 0.0  ;;  %v1384_v52 = vmax.f32 %v315_v47, 0.0 }
  0xbc   :  { %v1394_v58 = vmax.f32 %v258_v53, 0.0  ;;  %v1410_v8 = vmax.f32 %v278_v1, 0.0 }
  0xbd   :  { %v389_v54 = vmul.f32 %v1384_v52, %v1384_v52  ;;  %v381_v55 = vmul.f32 %v1382_v51, %v1382_v51 }
  0xbe   :  { %v366_v3 = vmul.f32 %v1394_v58, %v1394_v58  ;;  %v374_v15 = vmul.f32 %v1410_v8, %v1410_v8 }
  0xbf   :  { %446 = vadd.xlane.f32.xlu1 %v389_v54  ;;  %430 = vadd.xlane.f32.xlu2 %v381_v55 }
  0xc0   :  { %v317_v59 = vpop.f32.mrf.mxu3  ;;  %398 = vadd.xlane.f32.xlu0 %v365_v57  ;;  %v297_v60 = vpop.f32.mrf.mxu2 }
  0xc1   :  { %v318_v61 = vadd.f32 %v1355_v24, %v317_v59  ;;  %v259_v62 = vpop.f32.mrf.mxu0  ;;  %v279_v63 = vpop.f32.mrf.mxu1  ;;  %v298_v5 = vadd.f32 %v1355_v24, %v297_v60 }
  0xc2   :  { %v280_v4 = vadd.f32 %v1355_v24, %v279_v63  ;;  %v260_v19 = vadd.f32 %v1355_v24, %v259_v62 }
  0xc3   :  { %v1400_v2 = vmax.f32 %v318_v61, 0.0  ;;  %v1414_v10 = vmax.f32 %v298_v5, 0.0 }
  0xc4   :  { %v1412_v9 = vmax.f32 %v280_v4, 0.0  ;;  %v1427_v23 = vmax.f32 %v260_v19, 0.0 }
  0xc5   :  { %v390_v6 = vmul.f32 %v1400_v2, %v1400_v2  ;;  %v382_v17 = vmul.f32 %v1414_v10, %v1414_v10 }
  0xc6   :  { %v375_v14 = vmul.f32 %v1412_v9, %v1412_v9  ;;  %v367_v32 = vmul.f32 %v1427_v23, %v1427_v23 }
  0xc7   :  { %448 = vadd.xlane.f32.xlu2 %v390_v6  ;;  %400 = vadd.xlane.f32.xlu1 %v366_v3 }
  0xc8   :  { %414 = vadd.xlane.f32.xlu0 %v373_v7  ;;  %v299_v11 = vpop.f32.mrf.mxu2  ;;  %v319_v13 = vpop.f32.mrf.mxu3 }
  0xc9   :  { %v262_v12 = vpop.f32.mrf.mxu0  ;;  %v282_v18 = vpop.f32.mrf.mxu1  ;;  %v320_v20 = vadd.f32 %v1355_v24, %v319_v13  ;;  %v300_v31 = vadd.f32 %v1355_v24, %v299_v11 }
  0xca   :  { %v263_v16 = vadd.f32 %v1355_v24, %v262_v12  ;;  %v283_v28 = vadd.f32 %v1355_v24, %v282_v18 }
  0xcb   :  { %v1429_v25 = vmax.f32 %v320_v20, 0.0  ;;  %v1444_v38 = vmax.f32 %v300_v31, 0.0 }
  0xcc   :  { %v1425_v21 = vmax.f32 %v263_v16, 0.0  ;;  %v1442_v36 = vmax.f32 %v283_v28, 0.0 }
  0xcd   :  { %v391_v33 = vmul.f32 %v1429_v25, %v1429_v25  ;;  %v383_v47 = vmul.f32 %v1444_v38, %v1444_v38 }
  0xce   :  { %v368_v26 = vmul.f32 %v1425_v21, %v1425_v21  ;;  %v376_v45 = vmul.f32 %v1442_v36, %v1442_v36 }
  0xcf   :  { %418 = vadd.xlane.f32.xlu2 %v375_v14  ;;  %416 = vadd.xlane.f32.xlu1 %v374_v15 }
  0xd0   :  { %432 = vadd.xlane.f32.xlu0 %v382_v17  ;;  %v302_v22 = vpop.f32.mrf.mxu2  ;;  %v322_v42 = vpop.f32.mrf.mxu3 }
  0xd1   :  { %v303_v27 = vadd.f32 %v1355_v24, %v302_v22  ;;  %v284_v34 = vpop.f32.mrf.mxu1  ;;  %v264_v41 = vpop.f32.mrf.mxu0  ;;  %v323_v43 = vadd.f32 %v1355_v24, %v322_v42 }
  0xd2   :  { %v265_v46 = vadd.f32 %v1355_v24, %v264_v41  ;;  %v285_v62 = vadd.f32 %v1355_v24, %v284_v34 }
  0xd3   :  { %v1440_v35 = vmax.f32 %v303_v27, 0.0  ;;  %v1455_v49 = vmax.f32 %v323_v43, 0.0 }
  0xd4   :  { %v1457_v55 = vmax.f32 %v265_v46, 0.0  ;;  %v1474_v7 = vmax.f32 %v285_v62, 0.0 }
  0xd5   :  { %v384_v44 = vmul.f32 %v1440_v35, %v1440_v35  ;;  %v392_v57 = vmul.f32 %v1455_v49, %v1455_v49 }
  0xd6   :  { %v369_v63 = vmul.f32 %v1457_v55, %v1457_v55  ;;  %v377_v16 = vmul.f32 %v1474_v7, %v1474_v7 }
  0xd7   :  { %404 = vadd.xlane.f32.xlu2 %v368_v26  ;;  %402 = vadd.xlane.f32.xlu1 %v367_v32 }
  0xd8   :  { %450 = vadd.xlane.f32.xlu0 %v391_v33  ;;  %v304_v37 = vpop.f32.mrf.mxu2  ;;  %v324_v4 = vpop.f32.mrf.mxu3 }
  0xd9   :  { %v305_v48 = vadd.f32 %v1355_v24, %v304_v37  ;;  %v287_v53 = vpop.f32.mrf.mxu1  ;;  %v267_v59 = vpop.f32.mrf.mxu0  ;;  %v325_v31 = vadd.f32 %v1355_v24, %v324_v4 }
  0xda   :  { %v288_v60 = vadd.f32 %v1355_v24, %v287_v53  ;;  %v268_v61 = vadd.f32 %v1355_v24, %v267_v59 }
  0xdb   :  { %v1459_v56 = vmax.f32 %v305_v48, 0.0  ;;  %v1500_v37 = vmax.f32 %v325_v31, 0.0 }
  0xdc   :  { %v1470_v3 = vmax.f32 %v288_v60, 0.0  ;;  %v1472_v5 = vmax.f32 %v268_v61, 0.0 }
  0xdd   :  { %v385_v1 = vmul.f32 %v1459_v56, %v1459_v56 }
  0xde   :  { %v378_v12 = vmul.f32 %v1470_v3, %v1470_v3  ;;  %v370_v15 = vmul.f32 %v1472_v5, %v1472_v5 }
  0xdf   :  { %436 = vadd.xlane.f32.xlu2 %v384_v44  ;;  %434 = vadd.xlane.f32.xlu1 %v383_v47 }
  0xe0   :  { %420 = vadd.xlane.f32.xlu0 %v376_v45  ;;  %v307_v54 = vpop.f32.mrf.mxu2  ;;  %v327_v20 = vpop.f32.mrf.mxu3  ;;  %v393_v45 = vmul.f32 %v1500_v37, %v1500_v37 }
  0xe1   :  { %v308_v11 = vadd.f32 %v1355_v24, %v307_v54  ;;  %v289_v13 = vpop.f32.mrf.mxu1  ;;  %v269_v22 = vpop.f32.mrf.mxu0  ;;  %v328_v33 = vadd.f32 %v1355_v24, %v327_v20 }
  0xe2   :  { %v290_v17 = vadd.f32 %v1355_v24, %v289_v13  ;;  %v270_v32 = vadd.f32 %v1355_v24, %v269_v22 }
  0xe3   :  { %v1485_v18 = vmax.f32 %v308_v11, 0.0  ;;  %v1504_v42 = vmax.f32 %v328_v33, 0.0 }
  0xe4   :  { %v1489_v26 = vmax.f32 %v290_v17, 0.0  ;;  %v1502_v41 = vmax.f32 %v270_v32, 0.0 }
  0xe5   :  { %v386_v28 = vmul.f32 %v1485_v18, %v1485_v18  ;;  %v394_v47 = vmul.f32 %v1504_v42, %v1504_v42 }
  0xe6   :  { %v379_v34 = vmul.f32 %v1489_v26, %v1489_v26  ;;  %v371_v46 = vmul.f32 %v1502_v41, %v1502_v41 }
  0xe7   :  { %406 = vadd.xlane.f32.xlu2 %v369_v63  ;;  %452 = vadd.xlane.f32.xlu1 %v392_v57 }
  0xe8   :  { %438 = vadd.xlane.f32.xlu0 %v385_v1  ;;  %v309_v6 = vpop.f32.mrf.mxu2  ;;  %v329_v43 = vpop.f32.mrf.mxu3 }
  0xe9   :  { %v310_v14 = vadd.f32 %v1355_v24, %v309_v6  ;;  %v330_v44 = vadd.f32 %v1355_v24, %v329_v43 }
  0xeb   :  { %v1487_v19 = vmax.f32 %v310_v14, 0.0  ;;  %v1513_v48 = vmax.f32 %v330_v44, 0.0 }
  0xed   :  { %v387_v27 = vmul.f32 %v1487_v19, %v1487_v19  ;;  %v395_v53 = vmul.f32 %v1513_v48, %v1513_v48 }
  0xef   :  { %424 = vadd.xlane.f32.xlu2 %v378_v12  ;;  %422 = vadd.xlane.f32.xlu1 %v377_v16 }
  0xf0   :  { %408 = vadd.xlane.f32.xlu0 %v370_v15 }
  0xf7   :  { %442 = vadd.xlane.f32.xlu2 %v387_v27  ;;  %440 = vadd.xlane.f32.xlu1 %v386_v28 }
  0xf8   :  { %426 = vadd.xlane.f32.xlu0 %v379_v34 }
  0xff   :  { %454 = vadd.xlane.f32.xlu2 %v393_v45  ;;  %410 = vadd.xlane.f32.xlu1 %v371_v46 }
 0x100   :  { %456 = vadd.xlane.f32.xlu0 %v394_v47 }
 0x107   :  { %458 = vadd.xlane.f32.xlu1 %v395_v53 }
 0x123   :  { %v413_v54 = vpop.xlane.xlu2 %412  ;;  %v397_v24 = vpop.xlane.xlu0 %396 }
 0x124   :  { %v1517_v57 = vadd.f32 1e-24, %v413_v54  ;;  %v1519_v59 = vadd.f32 1e-24, %v397_v24 }
 0x126   :  { %1173 = vrsqrt.f32 %v1517_v57  ;;  %vm578_vm0 = vweird.f32 %v1517_v57  ;;  %vm498_vm2 = vweird.f32 %v1519_v59 }
 0x127   :  { %1175 = vrsqrt.f32 %v1519_v59 }
 0x12a   :  { %v429_v60 = vpop.xlane.xlu1 %428 }
 0x12b   :  { %v1523_v61 = vadd.f32 1e-24, %v429_v60  ;;  %v445_v62 = vpop.xlane.xlu0 %444 }
 0x12c   :  { %v1525_v63 = vpop.eup %1173  ;;  %v1527_v1 = vadd.f32 1e-24, %v445_v62 }
 0x12d   :  { %v1529_v4 = vpop.eup %1175  ;;  %1177 = vrsqrt.f32 %v1523_v61  ;;  %v573_v11 = vmul.f32 %v1525_v63, %v1517_v57  ;;  %vm579_vm1 = vweird.f32 %v1525_v63  ;;  %vm658_vm4 = vweird.f32 %v1523_v61 }
 0x12e   :  { %v493_v6 = vmul.f32 %v1529_v4, %v1519_v59  ;;  %1179 = vrsqrt.f32 %v1527_v1  ;;  %vm499_vm3 = vweird.f32 %v1529_v4  ;;  %vm738_vm5 = vweird.f32 %v1527_v1  ;;  %vm1610_vm11 = vmor %vm578_vm0, %vm579_vm1 }
 0x12f   :  { %v574_v16 = vmul.f32 %v1525_v63, %v573_v11  ;;  %vm1599_vm9 = vmor %vm498_vm2, %vm499_vm3 }
 0x130   :  { %v494_v12 = vmul.f32 %v1529_v4, %v493_v6 }
 0x131   :  { %v575_v43 = vmul.f32 0.5, %v574_v16 }
 0x132   :  { %v447_v13 = vpop.xlane.xlu1 %446  ;;  %v431_v14 = vpop.xlane.xlu2 %430  ;;  %v495_v33 = vmul.f32 0.5, %v494_v12 }
 0x133   :  { %v1538_v15 = vpop.eup %1177  ;;  %v1541_v17 = vadd.f32 1e-24, %v447_v13  ;;  %v1543_v20 = vadd.f32 1e-24, %v431_v14  ;;  %v399_v22 = vpop.xlane.xlu0 %398  ;;  %v576_v60 = vsub.f32 1.5, %v575_v43 }
 0x134   :  { %v1545_v27 = vpop.eup %1179  ;;  %v653_v28 = vmul.f32 %v1538_v15, %v1523_v61  ;;  %v1549_v31 = vadd.f32 1e-24, %v399_v22  ;;  %v496_v47 = vsub.f32 1.5, %v495_v33  ;;  %vm659_vm6 = vweird.f32 %v1538_v15 }
 0x135   :  { %v733_v32 = vmul.f32 %v1545_v27, %v1527_v1  ;;  %1181 = vrsqrt.f32 %v1541_v17  ;;  %vm739_vm7 = vweird.f32 %v1545_v27  ;;  %vm748_vm8 = vweird.f32 %v1541_v17  ;;  %vm1637_vm15 = vmor %vm658_vm4, %vm659_vm6 }
 0x136   :  { %v654_v34 = vmul.f32 %v1538_v15, %v653_v28  ;;  %1183 = vrsqrt.f32 %v1543_v20  ;;  %v497_v33 = vmul.f32 %v1529_v4, %v496_v47  ;;  %vm668_vm10 = vweird.f32 %v1543_v20  ;;  %vm1624_vm13 = vmor %vm738_vm5, %vm739_vm7 }
 0x137   :  { %v734_v44 = vmul.f32 %v1545_v27, %v733_v32  ;;  %1185 = vrsqrt.f32 %v1549_v31  ;;  %vm508_vm3 = vweird.f32 %v1549_v31 }
 0x138   :  { %v655_v45 = vmul.f32 0.5, %v654_v34  ;;  %v501_v59 = vsel %vm1599_vm9, %v1529_v4, %v497_v33 }
 0x139   :  { %v735_v46 = vmul.f32 0.5, %v734_v44  ;;  %v1587_v44 = vmul.f32 %v1525_v63, %v576_v60 }
 0x13a   :  { %v449_v53 = vpop.xlane.xlu2 %448  ;;  %v401_v54 = vpop.xlane.xlu1 %400  ;;  %v656_v22 = vsub.f32 1.5, %v655_v45 }
 0x13b   :  { %v1561_v24 = vpop.eup %1181  ;;  %v1565_v62 = vadd.f32 1e-24, %v449_v53  ;;  %v415_v6 = vpop.xlane.xlu0 %414  ;;  %v736_v12 = vsub.f32 1.5, %v735_v46  ;;  %v1572_v14 = vadd.f32 1e-24, %v401_v54 }
 0x13c   :  { %v1567_v11 = vpop.eup %1183  ;;  %v743_v13 = vmul.f32 %v1561_v24, %v1541_v17  ;;  %v1579_v32 = vadd.f32 1e-24, %v415_v6  ;;  %v657_v60 = vmul.f32 %v1538_v15, %v656_v22  ;;  %vm749_vm12 = vweird.f32 %v1561_v24 }
 0x13d   :  { %v1574_v16 = vpop.eup %1185  ;;  %v663_v28 = vmul.f32 %v1567_v11, %v1543_v20  ;;  %1187 = vrsqrt.f32 %v1565_v62  ;;  %v737_v46 = vmul.f32 %v1545_v27, %v736_v12  ;;  %vm669_vm14 = vweird.f32 %v1567_v11  ;;  %vm750_vm1 = vmor %vm748_vm8, %vm749_vm12 }
 0x13e   :  { %v744_v34 = vmul.f32 %v1561_v24, %v743_v13  ;;  %v503_v43 = vmul.f32 %v1574_v16, %v1549_v31  ;;  %1189 = vrsqrt.f32 %v1572_v14  ;;  %vm509_vm0 = vweird.f32 %v1574_v16  ;;  %vm670_vm2 = vmor %vm668_vm10, %vm669_vm14 }
 0x13f   :  { %v664_v45 = vmul.f32 %v1567_v11, %v663_v28  ;;  %1191 = vrsqrt.f32 %v1579_v32  ;;  %v741_v1 = vsel %vm1624_vm13, %v1545_v27, %v737_v46  ;;  %vm510_vm4 = vmor %vm508_vm3, %vm509_vm0  ;;  %v812_v12 = vmul.f32 %v501_v59, %v1359_v29 }
 0x140   :  { %v745_v53 = vmul.f32 0.5, %v744_v34  ;;  %v504_v47 = vmul.f32 %v1574_v16, %v503_v43  ;;  %vm758_vm6 = vweird.f32 %v1565_v62  ;;  %vm588_vm7 = vweird.f32 %v1579_v32 }
 0x141   :  { %v665_v6 = vmul.f32 0.5, %v664_v45 }
 0x142   :  { %v746_v13 = vsub.f32 1.5, %v745_v53  ;;  %v505_v22 = vmul.f32 0.5, %v504_v47  ;;  %v419_v28 = vpop.xlane.xlu2 %418  ;;  %v417_v34 = vpop.xlane.xlu1 %416 }
 0x143   :  { %v1618_v43 = vpop.eup %1187  ;;  %v666_v45 = vsub.f32 1.5, %v665_v6  ;;  %v1629_v4 = vadd.f32 1e-24, %v419_v28  ;;  %v1631_v33 = vadd.f32 1e-24, %v417_v34  ;;  %v433_v53 = vpop.xlane.xlu0 %432  ;;  %v661_v28 = vsel %vm1637_vm15, %v1538_v15, %v657_v60 }
 0x144   :  { %v747_v54 = vmul.f32 %v1561_v24, %v746_v13  ;;  %v506_v6 = vsub.f32 1.5, %v505_v22  ;;  %v753_v34 = vmul.f32 %v1618_v43, %v1565_v62  ;;  %v1657_v27 = vpop.eup %1189  ;;  %v581_v60 = vsel %vm1610_vm11, %v1525_v63, %v1587_v44 }
 0x145   :  { %v667_v61 = vmul.f32 %v1567_v11, %v666_v45  ;;  %1193 = vrsqrt.f32 %v1629_v4  ;;  %v1192_v17 = vpop.eup %1191  ;;  %v836_v13 = vmul.f32 %v741_v1, %v1371_v40  ;;  %v828_v20 = vmul.f32 %v661_v28, %v1369_v39 }
 0x146   :  { %v751_v46 = vsel %vm750_vm1, %v1561_v24, %v747_v54  ;;  %v507_v15 = vmul.f32 %v1574_v16, %v506_v6  ;;  %1195 = vrsqrt.f32 %v1631_v33  ;;  %v583_v45 = vmul.f32 %v1192_v17, %v1579_v32 }
 0x147   :  { %v837_v24 = vmul.f32 %v751_v46, %v1384_v52  ;;  %v671_v22 = vsel %vm670_vm2, %v1567_v11, %v667_v61  ;;  %v754_v52 = vmul.f32 %v1618_v43, %v753_v34  ;;  %v513_v11 = vmul.f32 %v1657_v27, %v1572_v14 }
 0x148   :  { %v829_v31 = vmul.f32 %v671_v22, %v1382_v51  ;;  %v511_v57 = vsel %vm510_vm4, %v1574_v16, %v507_v15  ;;  %v584_v47 = vmul.f32 %v1192_v17, %v583_v45  ;;  %v1685_v1 = vadd.f32 1e-24, %v433_v53 }
 0x149   :  { %v1111_v63 = vpack.c.bf16 %v837_v24, %v836_v13  ;;  %v813_v40 = vmul.f32 %v511_v57, %v1380_v50  ;;  %v820_v34 = vmul.f32 %v581_v60, %v1361_v30  ;;  %v755_v53 = vmul.f32 0.5, %v754_v52 }
 0x14a   :  { %v1091_v44 = vpack.c.bf16 %v829_v31, %v828_v20  ;;  %v405_v39 = vpop.xlane.xlu2 %404  ;;  %v403_v51 = vpop.xlane.xlu1 %402  ;;  %v585_v50 = vmul.f32 0.5, %v584_v47  ;;  %1197 = vrsqrt.f32 %v1685_v1  ;;  %v514_v15 = vmul.f32 %v1657_v27, %v513_v11 }
 0x14b   :  { %v1194_v54 = vpop.eup %1193  ;;  %1139 = vst [vmem:[#allocation7 + $0x60] sm:$0xff] %v1111_v63   ;;  %v1051_v16 = vpack.c.bf16 %v813_v40, %v812_v12  ;;  %v1687_v6 = vadd.f32 1e-24, %v405_v39  ;;  %v451_v29 = vpop.xlane.xlu0 %450  ;;  %v1690_v61 = vadd.f32 1e-24, %v403_v51  ;;  %vm589_vm5 = vweird.f32 %v1192_v17 }
 0x14c   :  { %v1196_v59 = vpop.eup %1195  ;;  %1135 = vst [vmem:[#allocation7 + $0x40] sm:$0xff] %v1091_v44   ;;  %v603_v28 = vmul.f32 %v1194_v54, %v1629_v4  ;;  %v586_v13 = vsub.f32 1.5, %v585_v50  ;;  %vm759_vm8 = vweird.f32 %v1618_v43  ;;  %v756_v20 = vsub.f32 1.5, %v755_v53  ;;  %vm590_vm9 = vmor %vm588_vm7, %vm589_vm5 }
 0x14d   :  { %1052 = vst [vmem:[#allocation7] sm:$0xff] %v1051_v16   ;;  %v593_v46 = vmul.f32 %v1196_v59, %v1631_v33  ;;  %1199 = vrsqrt.f32 %v1687_v6  ;;  %vm608_vm10 = vweird.f32 %v1629_v4  ;;  %v1702_v57 = vadd.f32 1e-24, %v451_v29  ;;  %vm1737_vm0 = vmor %vm758_vm6, %vm759_vm8 }
 0x14e   :  { %v604_v24 = vmul.f32 %v1194_v54, %v603_v28  ;;  %v587_v30 = vmul.f32 %v1192_v17, %v586_v13  ;;  %1201 = vrsqrt.f32 %v1690_v61  ;;  %v515_v45 = vmul.f32 0.5, %v514_v15 }
 0x14f   :  { %v594_v22 = vmul.f32 %v1196_v59, %v593_v46  ;;  %vm609_vm11 = vweird.f32 %v1194_v54  ;;  %vm599_vm12 = vweird.f32 %v1196_v59  ;;  %1203 = vrsqrt.f32 %v1702_v57 }
 0x150   :  { %v605_v60 = vmul.f32 0.5, %v604_v24  ;;  %v591_v12 = vsel %vm590_vm9, %v1192_v17, %v587_v30  ;;  %v1704_v52 = vpop.eup %1197  ;;  %vm598_vm13 = vweird.f32 %v1631_v33  ;;  %v757_v29 = vmul.f32 %v1618_v43, %v756_v20  ;;  %vm610_vm14 = vmor %vm608_vm10, %vm609_vm11 }
 0x151   :  { %v595_v31 = vmul.f32 0.5, %v594_v22  ;;  %v821_v44 = vmul.f32 %v591_v12, %v1397_v0  ;;  %v673_v51 = vmul.f32 %v1704_v52, %v1685_v1  ;;  %v516_v46 = vsub.f32 1.5, %v515_v45  ;;  %vm600_vm15 = vmor %vm598_vm13, %vm599_vm12 }
 0x152   :  { %v606_v63 = vsub.f32 1.5, %v605_v60  ;;  %v437_v32 = vpop.xlane.xlu2 %436  ;;  %v435_v40 = vpop.xlane.xlu1 %434  ;;  %vm519_vm1 = vweird.f32 %v1657_v27  ;;  %vm518_vm2 = vweird.f32 %v1572_v14  ;;  %vm678_vm4 = vweird.f32 %v1685_v1 }
 0x153   :  { %v596_v11 = vsub.f32 1.5, %v595_v31  ;;  %v421_v47 = vpop.xlane.xlu0 %420  ;;  %v1711_v17 = vadd.f32 1e-24, %v437_v32  ;;  %v1713_v16 = vpop.eup %1199  ;;  %v1071_v50 = vpack.c.bf16 %v821_v44, %v820_v34  ;;  %v1719_v28 = vadd.f32 1e-24, %v435_v40  ;;  %vm1758_vm3 = vmor %vm518_vm2, %vm519_vm1 }
 0x154   :  { %v607_v39 = vmul.f32 %v1194_v54, %v606_v63  ;;  %v1202_v53 = vpop.eup %1201  ;;  %v674_v15 = vmul.f32 %v1704_v52, %v673_v51  ;;  %v1723_v13 = vadd.f32 1e-24, %v421_v47  ;;  %v533_v4 = vmul.f32 %v1713_v16, %v1687_v6 }
 0x155   :  { %v597_v0 = vmul.f32 %v1196_v59, %v596_v11  ;;  %1131 = vst [vmem:[#allocation7 + $0x20] sm:$0xff] %v1071_v50   ;;  %v523_v22 = vmul.f32 %v1202_v53, %v1690_v61  ;;  %1205 = vrsqrt.f32 %v1711_v17  ;;  %vm529_vm5 = vweird.f32 %v1202_v53 }
 0x156   :  { %v611_v33 = vsel %vm610_vm14, %v1194_v54, %v607_v39  ;;  %v1731_v54 = vpop.eup %1203  ;;  %1207 = vrsqrt.f32 %v1719_v28  ;;  %v675_v12 = vmul.f32 0.5, %v674_v15  ;;  %v534_v63 = vmul.f32 %v1713_v16, %v533_v4 }
 0x157   :  { %v823_v24 = vmul.f32 %v611_v33, %v1412_v9  ;;  %v601_v34 = vsel %vm600_vm15, %v1196_v59, %v597_v0  ;;  %v524_v9 = vmul.f32 %v1202_v53, %v523_v22  ;;  %v517_v59 = vmul.f32 %v1657_v27, %v516_v46 }
 0x158   :  { %v822_v30 = vmul.f32 %v601_v34, %v1410_v8  ;;  %v761_v8 = vsel %vm1737_vm0, %v1618_v43, %v757_v29  ;;  %v763_v31 = vmul.f32 %v1731_v54, %v1702_v57  ;;  %1209 = vrsqrt.f32 %v1723_v13 }
 0x159   :  { %v525_v32 = vmul.f32 0.5, %v524_v9  ;;  %v838_v11 = vmul.f32 %v761_v8, %v1400_v2  ;;  %v521_v14 = vsel %vm1758_vm3, %v1657_v27, %v517_v59  ;;  %vm528_vm6 = vweird.f32 %v1690_v61 }
 0x15a   :  { %v1076_v20 = vpack.c.bf16 %v823_v24, %v822_v30  ;;  %v407_v62 = vpop.xlane.xlu2 %406  ;;  %v453_v45 = vpop.xlane.xlu1 %452  ;;  %v764_v43 = vmul.f32 %v1731_v54, %v763_v31  ;;  %v676_v50 = vsub.f32 1.5, %v675_v12  ;;  %v535_v0 = vmul.f32 0.5, %v534_v63  ;;  %vm530_vm8 = vmor %vm528_vm6, %vm529_vm5 }
 0x15b   :  { %v439_v40 = vpop.xlane.xlu0 %438  ;;  %v1753_v44 = vadd.f32 1e-24, %v407_v62  ;;  %v526_v39 = vsub.f32 1.5, %v525_v32  ;;  %v1763_v51 = vpop.eup %1205  ;;  %v1772_v33 = vadd.f32 1e-24, %v453_v45  ;;  %vm538_vm7 = vweird.f32 %v1687_v6 }
 0x15c   :  { %1132 = vst [vmem:[#allocation7 + $0x28] sm:$0xff] %v1076_v20   ;;  %v765_v29 = vmul.f32 0.5, %v764_v43  ;;  %v1770_v2 = vpop.eup %1207  ;;  %vm769_vm9 = vweird.f32 %v1731_v54  ;;  %v693_v27 = vmul.f32 %v1763_v51, %v1711_v17  ;;  %v814_v34 = vmul.f32 %v521_v14, %v1394_v58 }
 0x15d   :  { %1211 = vrsqrt.f32 %v1753_v44  ;;  %v527_v46 = vmul.f32 %v1202_v53, %v526_v39  ;;  %v683_v61 = vmul.f32 %v1770_v2, %v1719_v28  ;;  %vm768_vm10 = vweird.f32 %v1702_v57 }
 0x15e   :  { %v766_v15 = vsub.f32 1.5, %v765_v29  ;;  %v1780_v24 = vpop.eup %1209  ;;  %v1784_v22 = vadd.f32 1e-24, %v439_v40  ;;  %v677_v31 = vmul.f32 %v1704_v52, %v676_v50  ;;  %vm679_vm11 = vweird.f32 %v1704_v52  ;;  %vm770_vm12 = vmor %vm768_vm10, %vm769_vm9 }
 0x15f   :  { %v531_v4 = vsel %vm530_vm8, %v1202_v53, %v527_v46  ;;  %v684_v9 = vmul.f32 %v1770_v2, %v683_v61  ;;  %v613_v8 = vmul.f32 %v1780_v24, %v1723_v13  ;;  %v536_v58 = vsub.f32 1.5, %v535_v0  ;;  %vm1807_vm15 = vmor %vm678_vm4, %vm679_vm11 }
 0x160   :  { %v815_v30 = vmul.f32 %v531_v4, %v1427_v23  ;;  %v767_v60 = vmul.f32 %v1731_v54, %v766_v15  ;;  %1213 = vrsqrt.f32 %v1772_v33  ;;  %v694_v62 = vmul.f32 %v1763_v51, %v693_v27 }
 0x161   :  { %v685_v45 = vmul.f32 0.5, %v684_v9  ;;  %vm539_vm13 = vweird.f32 %v1713_v16  ;;  %vm688_vm14 = vweird.f32 %v1719_v28  ;;  %vm689_vm0 = vweird.f32 %v1770_v2 }
 0x162   :  { %v425_v59 = vpop.xlane.xlu2 %424  ;;  %v423_v20 = vpop.xlane.xlu1 %422  ;;  %v1056_v57 = vpack.c.bf16 %v815_v30, %v814_v34  ;;  %v771_v53 = vsel %vm770_vm12, %v1731_v54, %v767_v60  ;;  %v614_v43 = vmul.f32 %v1780_v24, %v613_v8  ;;  %1215 = vrsqrt.f32 %v1784_v22  ;;  %vm690_vm1 = vmor %vm688_vm14, %vm689_vm0 }
 0x163   :  { %v1796_v23 = vpop.eup %1211  ;;  %v409_v12 = vpop.xlane.xlu0 %408  ;;  %v839_v63 = vmul.f32 %v771_v53, %v1429_v25  ;;  %v686_v54 = vsub.f32 1.5, %v685_v45  ;;  %v681_v25 = vsel %vm1807_vm15, %v1704_v52, %v677_v31  ;;  %v1818_v1 = vadd.f32 1e-24, %v425_v59  ;;  %vm1837_vm2 = vmor %vm538_vm7, %vm539_vm13 }
 0x164   :  { %v543_v32 = vmul.f32 %v1796_v23, %v1753_v44  ;;  %1128 = vst [vmem:[#allocation7 + $0x8] sm:$0xff] %v1056_v57   ;;  %v537_v14 = vmul.f32 %v1713_v16, %v536_v58  ;;  %v695_v29 = vmul.f32 0.5, %v694_v62  ;;  %v1822_v0 = vadd.f32 1e-24, %v423_v20 }
 0x165   :  { %v1116_v47 = vpack.c.bf16 %v839_v63, %v838_v11  ;;  %v687_v50 = vmul.f32 %v1770_v2, %v686_v54  ;;  %1217 = vrsqrt.f32 %v1818_v1  ;;  %v1829_v52 = vadd.f32 1e-24, %v409_v12 }
 0x166   :  { %v544_v39 = vmul.f32 %v1796_v23, %v543_v32  ;;  %v1824_v46 = vpop.eup %1213  ;;  %v830_v11 = vmul.f32 %v681_v25, %v1414_v10  ;;  %v615_v61 = vmul.f32 0.5, %v614_v43  ;;  %vm549_vm3 = vweird.f32 %v1796_v23 }
 0x167   :  { %1140 = vst [vmem:[#allocation7 + $0x68] sm:$0xff] %v1116_v47   ;;  %v691_v27 = vsel %vm690_vm1, %v1770_v2, %v687_v50  ;;  %1219 = vrsqrt.f32 %v1822_v0  ;;  %v541_v2 = vsel %vm1837_vm2, %v1713_v16, %v537_v14  ;;  %v696_v9 = vsub.f32 1.5, %v695_v29 }
 0x168   :  { %v545_v15 = vmul.f32 0.5, %v544_v39  ;;  %v831_v28 = vmul.f32 %v691_v27, %v1444_v38  ;;  %v1844_v10 = vpop.eup %1215  ;;  %vm548_vm4 = vweird.f32 %v1753_v44  ;;  %v773_v6 = vmul.f32 %v1824_v46, %v1772_v33 }
 0x169   :  { %v703_v59 = vmul.f32 %v1844_v10, %v1784_v22  ;;  %1221 = vrsqrt.f32 %v1829_v52  ;;  %vm698_vm5 = vweird.f32 %v1711_v17  ;;  %v616_v20 = vsub.f32 1.5, %v615_v61  ;;  %vm550_vm7 = vmor %vm548_vm4, %vm549_vm3 }
 0x16a   :  { %v443_v34 = vpop.xlane.xlu2 %442  ;;  %v441_v4 = vpop.xlane.xlu1 %440  ;;  %v546_v60 = vsub.f32 1.5, %v545_v15  ;;  %v1096_v8 = vpack.c.bf16 %v831_v28, %v830_v11  ;;  %vm618_vm6 = vweird.f32 %v1723_v13  ;;  %v816_v58 = vmul.f32 %v541_v2, %v1425_v21 }
 0x16b   :  { %v1858_v16 = vadd.f32 1e-24, %v443_v34  ;;  %v427_v44 = vpop.xlane.xlu0 %426  ;;  %v1860_v31 = vpop.eup %1217  ;;  %vm699_vm8 = vweird.f32 %v1763_v51  ;;  %v704_v53 = vmul.f32 %v1844_v10, %v703_v59  ;;  %v697_v62 = vmul.f32 %v1763_v51, %v696_v9 }
 0x16c   :  { %v547_v38 = vmul.f32 %v1796_v23, %v546_v60  ;;  %1136 = vst [vmem:[#allocation7 + $0x48] sm:$0xff] %v1096_v8   ;;  %v633_v12 = vmul.f32 %v1860_v31, %v1818_v1  ;;  %v1870_v63 = vadd.f32 1e-24, %v441_v4  ;;  %v774_v21 = vmul.f32 %v1824_v46, %v773_v6  ;;  %vm1888_vm10 = vmor %vm698_vm5, %vm699_vm8 }
 0x16d   :  { %v1872_v32 = vpop.eup %1219  ;;  %v705_v40 = vmul.f32 0.5, %v704_v53  ;;  %1223 = vrsqrt.f32 %v1858_v16  ;;  %v1876_v54 = vadd.f32 1e-24, %v427_v44  ;;  %vm619_vm9 = vweird.f32 %v1780_v24 }
 0x16e   :  { %v551_v57 = vsel %vm550_vm7, %v1796_v23, %v547_v38  ;;  %v617_v23 = vmul.f32 %v1780_v24, %v616_v20  ;;  %vm709_vm11 = vweird.f32 %v1844_v10  ;;  %v634_v14 = vmul.f32 %v1860_v31, %v633_v12  ;;  %vm1901_vm12 = vmor %vm618_vm6, %vm619_vm9 }
 0x16f   :  { %v817_v45 = vmul.f32 %v551_v57, %v1457_v55  ;;  %v623_v55 = vmul.f32 %v1872_v32, %v1822_v0  ;;  %v1882_v25 = vpop.eup %1221  ;;  %v706_v39 = vsub.f32 1.5, %v705_v40  ;;  %v701_v50 = vsel %vm1888_vm10, %v1763_v51, %v697_v62 }
 0x170   :  { %1225 = vrsqrt.f32 %v1870_v63  ;;  %v775_v27 = vmul.f32 0.5, %v774_v21  ;;  %vm708_vm13 = vweird.f32 %v1784_v22  ;;  %v621_v51 = vsel %vm1901_vm12, %v1780_v24, %v617_v23 }
 0x171   :  { %v1061_v43 = vpack.c.bf16 %v817_v45, %v816_v58  ;;  %v624_v15 = vmul.f32 %v1872_v32, %v623_v55  ;;  %v707_v61 = vmul.f32 %v1844_v10, %v706_v39  ;;  %1227 = vrsqrt.f32 %v1876_v54  ;;  %vm710_vm14 = vmor %vm708_vm13, %vm709_vm11 }
 0x172   :  { %v455_v29 = vpop.xlane.xlu2 %454  ;;  %v411_v17 = vpop.xlane.xlu1 %410  ;;  %v553_v13 = vmul.f32 %v1882_v25, %v1829_v52  ;;  %v832_v28 = vmul.f32 %v701_v50, %v1440_v35  ;;  %v635_v22 = vmul.f32 0.5, %v634_v14  ;;  %vm638_vm15 = vweird.f32 %v1818_v1 }
 0x173   :  { %1129 = vst [vmem:[#allocation7 + $0x10] sm:$0xff] %v1061_v43   ;;  %v625_v34 = vmul.f32 0.5, %v624_v15  ;;  %v1913_v4 = vadd.f32 1e-24, %v455_v29  ;;  %v1915_v30 = vpop.eup %1223  ;;  %v711_v60 = vsel %vm710_vm14, %v1844_v10, %v707_v61  ;;  %vm628_vm0 = vweird.f32 %v1822_v0  ;;  %v457_v6 = vpop.xlane.xlu0 %456 }
 0x174   :  { %vm779_vm1 = vweird.f32 %v1824_v46  ;;  %v833_v24 = vmul.f32 %v711_v60, %v1459_v56  ;;  %vm629_vm2 = vweird.f32 %v1872_v32  ;;  %v723_v9 = vmul.f32 %v1915_v30, %v1858_v16 }
 0x175   :  { %v626_v2 = vsub.f32 1.5, %v625_v34  ;;  %v824_v35 = vmul.f32 %v621_v51, %v1442_v36  ;;  %v776_v8 = vsub.f32 1.5, %v775_v27  ;;  %1229 = vrsqrt.f32 %v1913_v4  ;;  %vm630_vm5 = vmor %vm628_vm0, %vm629_vm2 }
 0x176   :  { %v1928_v10 = vadd.f32 1e-24, %v411_v17  ;;  %v1930_v38 = vpop.eup %1225  ;;  %vm778_vm3 = vweird.f32 %v1772_v33  ;;  %v1101_v59 = vpack.c.bf16 %v833_v24, %v832_v28  ;;  %v554_v20 = vmul.f32 %v1882_v25, %v553_v13 }
 0x177   :  { %v627_v56 = vmul.f32 %v1872_v32, %v626_v2  ;;  %v724_v44 = vmul.f32 %v1915_v30, %v723_v9  ;;  %v1936_v58 = vpop.eup %1227  ;;  %v636_v57 = vsub.f32 1.5, %v635_v22  ;;  %vm639_vm4 = vweird.f32 %v1860_v31  ;;  %vm1993_vm0 = vmor %vm778_vm3, %vm779_vm1 }
 0x178   :  { %v713_v36 = vmul.f32 %v1930_v38, %v1870_v63  ;;  %v1945_v53 = vadd.f32 1e-24, %v457_v6  ;;  %1137 = vst [vmem:[#allocation7 + $0x50] sm:$0xff] %v1101_v59   ;;  %vm728_vm6 = vweird.f32 %v1858_v16  ;;  %v643_v12 = vmul.f32 %v1936_v58, %v1876_v54  ;;  %vm1980_vm13 = vmor %vm638_vm15, %vm639_vm4 }
 0x179   :  { %v631_v62 = vsel %vm630_vm5, %v1872_v32, %v627_v56  ;;  %v725_v45 = vmul.f32 0.5, %v724_v44  ;;  %vm718_vm7 = vweird.f32 %v1870_v63  ;;  %1231 = vrsqrt.f32 %v1928_v10 }
 0x17a   :  { %v825_v21 = vmul.f32 %v631_v62, %v1474_v7  ;;  %v714_v40 = vmul.f32 %v1930_v38, %v713_v36  ;;  %v555_v0 = vmul.f32 0.5, %v554_v20  ;;  %vm729_vm8 = vweird.f32 %v1915_v30  ;;  %v459_v43 = vpop.xlane.xlu1 %458 }
 0x17b   :  { %v726_v23 = vsub.f32 1.5, %v725_v45  ;;  %v644_v32 = vmul.f32 %v1936_v58, %v643_v12  ;;  %v1957_v55 = vpop.eup %1229  ;;  %v637_v47 = vmul.f32 %v1860_v31, %v636_v57  ;;  %1233 = vrsqrt.f32 %v1945_v53  ;;  %vm1968_vm10 = vmor %vm728_vm6, %vm729_vm8 }
 0x17c   :  { %v1081_v39 = vpack.c.bf16 %v825_v21, %v824_v35  ;;  %v715_v14 = vmul.f32 0.5, %v714_v40  ;;  %v777_v7 = vmul.f32 %v1824_v46, %v776_v8  ;;  %vm558_vm9 = vweird.f32 %v1829_v52 }
 0x17d   :  { %v727_v29 = vmul.f32 %v1915_v30, %v726_v23  ;;  %v645_v50 = vmul.f32 0.5, %v644_v32  ;;  %v783_v15 = vmul.f32 %v1957_v55, %v1913_v4  ;;  %vm719_vm11 = vweird.f32 %v1930_v38 }
 0x17e   :  { %1133 = vst [vmem:[#allocation7 + $0x30] sm:$0xff] %v1081_v39   ;;  %v716_v11 = vsub.f32 1.5, %v715_v14  ;;  %vm648_vm12 = vweird.f32 %v1876_v54  ;;  %v1974_v27 = vadd.f32 1e-24, %v459_v43  ;;  %vm649_vm14 = vweird.f32 %v1936_v58  ;;  %vm720_vm15 = vmor %vm718_vm7, %vm719_vm11 }
 0x17f   :  { %v731_v16 = vsel %vm1968_vm10, %v1915_v30, %v727_v29  ;;  %v646_v51 = vsub.f32 1.5, %v645_v50  ;;  %v784_v34 = vmul.f32 %v1957_v55, %v783_v15  ;;  %v1232_v13 = vpop.eup %1231  ;;  %v641_v28 = vsel %vm1980_vm13, %v1860_v31, %v637_v47  ;;  %vm650_vm2 = vmor %vm648_vm12, %vm649_vm14 }
 0x180   :  { %v556_v60 = vsub.f32 1.5, %v555_v0  ;;  %v717_v30 = vmul.f32 %v1930_v38, %v716_v11  ;;  %1235 = vrsqrt.f32 %v1974_v27  ;;  %v835_v22 = vmul.f32 %v731_v16, %v1487_v19 }
 0x181   :  { %v647_v33 = vmul.f32 %v1936_v58, %v646_v51  ;;  %v785_v24 = vmul.f32 0.5, %v784_v34  ;;  %v563_v2 = vmul.f32 %v1232_v13, %v1928_v10  ;;  %v1234_v9 = vpop.eup %1233  ;;  %v781_v31 = vsel %vm1993_vm0, %v1824_v46, %v777_v7 }
 0x182   :  { %vm559_vm1 = vweird.f32 %v1882_v25  ;;  %v721_v6 = vsel %vm720_vm15, %v1930_v38, %v717_v30  ;;  %vm789_vm3 = vweird.f32 %v1957_v55  ;;  %v826_v59 = vmul.f32 %v641_v28, %v1470_v3 }
 0x183   :  { %v834_v19 = vmul.f32 %v721_v6, %v1485_v18  ;;  %v651_v63 = vsel %vm650_vm2, %v1936_v58, %v647_v33  ;;  %v786_v35 = vsub.f32 1.5, %v785_v24  ;;  %v564_v8 = vmul.f32 %v1232_v13, %v563_v2  ;;  %vm560_vm7 = vmor %vm558_vm9, %vm559_vm1 }
 0x184   :  { %v827_v46 = vmul.f32 %v651_v63, %v1489_v26  ;;  %vm788_vm4 = vweird.f32 %v1913_v4  ;;  %v793_v38 = vmul.f32 %v1234_v9, %v1945_v53  ;;  %v557_v56 = vmul.f32 %v1882_v25, %v556_v60 }
 0x185   :  { %v1106_v54 = vpack.c.bf16 %v835_v22, %v834_v19  ;;  %v787_v20 = vmul.f32 %v1957_v55, %v786_v35  ;;  %v565_v44 = vmul.f32 0.5, %v564_v8  ;;  %vm790_vm5 = vmor %vm788_vm4, %vm789_vm3  ;;  %vm569_vm6 = vweird.f32 %v1232_v13 }
 0x186   :  { %v1236_v57 = vpop.eup %1235  ;;  %v1086_v18 = vpack.c.bf16 %v827_v46, %v826_v59  ;;  %v794_v58 = vmul.f32 %v1234_v9, %v793_v38  ;;  %v840_v36 = vmul.f32 %v781_v31, %v1455_v49  ;;  %v561_v12 = vsel %vm560_vm7, %v1882_v25, %v557_v56 }
 0x187   :  { %1138 = vst [vmem:[#allocation7 + $0x58] sm:$0xff] %v1106_v54   ;;  %v791_v3 = vsel %vm790_vm5, %v1957_v55, %v787_v20  ;;  %v566_v26 = vsub.f32 1.5, %v565_v44  ;;  %v803_v4 = vmul.f32 %v1236_v57, %v1974_v27  ;;  %vm568_vm8 = vweird.f32 %v1928_v10 }
 0x188   :  { %1134 = vst [vmem:[#allocation7 + $0x38] sm:$0xff] %v1086_v18   ;;  %v841_v62 = vmul.f32 %v791_v3, %v1500_v37  ;;  %v795_v45 = vmul.f32 0.5, %v794_v58  ;;  %vm570_vm10 = vmor %vm568_vm8, %vm569_vm6  ;;  %vm799_vm11 = vweird.f32 %v1234_v9  ;;  %v818_v43 = vmul.f32 %v561_v12, %v1472_v5 }
 0x189   :  { %v567_v21 = vmul.f32 %v1232_v13, %v566_v26  ;;  %v804_v40 = vmul.f32 %v1236_v57, %v803_v4  ;;  %vm798_vm9 = vweird.f32 %v1945_v53  ;;  %vm809_vm12 = vweird.f32 %v1236_v57 }
 0x18a   :  { %v1121_v0 = vpack.c.bf16 %v841_v62, %v840_v36  ;;  %v796_v23 = vsub.f32 1.5, %v795_v45  ;;  %vm800_vm13 = vmor %vm798_vm9, %vm799_vm11  ;;  %vm808_vm14 = vweird.f32 %v1974_v27 }
 0x18b   :  { %v571_v32 = vsel %vm570_vm10, %v1232_v13, %v567_v21  ;;  %v805_v49 = vmul.f32 0.5, %v804_v40  ;;  %vm810_vm0 = vmor %vm808_vm14, %vm809_vm12 }
 0x18c   :  { %1141 = vst [vmem:[#allocation7 + $0x70] sm:$0xff] %v1121_v0   ;;  %v819_v52 = vmul.f32 %v571_v32, %v1502_v41  ;;  %v797_v55 = vmul.f32 %v1234_v9, %v796_v23 }
 0x18d   :  { %v806_v37 = vsub.f32 1.5, %v805_v49 }
 0x18e   :  { %v1066_v25 = vpack.c.bf16 %v819_v52, %v818_v43  ;;  %v801_v10 = vsel %vm800_vm13, %v1234_v9, %v797_v55 }
 0x18f   :  { %v807_v47 = vmul.f32 %v1236_v57, %v806_v37  ;;  %v842_v5 = vmul.f32 %v801_v10, %v1504_v42 }
 0x190   :  { %1130 = vst [vmem:[#allocation7 + $0x18] sm:$0xff] %v1066_v25  }
 0x191   :  { %v811_v39 = vsel %vm810_vm0, %v1236_v57, %v807_v47 }
 0x192   :  { %v843_v41 = vmul.f32 %v811_v39, %v1513_v48 }
 0x194   :  { %v1126_v53 = vpack.c.bf16 %v843_v41, %v842_v5 }
 0x196   :  { %1142 = vst [vmem:[#allocation7 + $0x78] sm:$0xff] %v1126_v53  }
 0x197   :  { %920 = dma.vmem_to_hbm [thread:$0]  %s913_s24, 2048, %s915_s27, [#allocation4], %s1316_s20, %s1316_s20, %s1317_s21  }
 0x198   :  { %1313 = dma.done.wait [#allocation4], 2048  }
 0x199   :  { %1314 = vsyncadd [#allocation4], 4294965248 }
 0x19a   :  { %925 = vsyncpa [#allocation3], 1 }
 0x19b   :  { %926 = vsyncpa [#allocation6], 1 }
 0x19c   :  { %927 = vsyncpa [#allocation4], 1 }

</bundles_post_ra>
